<compile_context>
chip_gen: v7x
topology: tpu7x:2x2x1
jax: 0.10.0
libtpu: 0.0.40
codegen_flags: <defaults>
</compile_context>

<pallas_src>
import functools

import numpy as np
import jax
import jax.numpy as jnp
from jax import lax
from jax.experimental import pallas as pl
from jax.experimental.pallas import tpu as pltpu

FLOAT32_MIN = float(np.finfo(np.float32).min)
LN_EPS = 1e-5


# ----------------------------------------------------------------------------
# small helpers
# ----------------------------------------------------------------------------
def _layer_norm(x, g, b, eps):
    mean = jnp.mean(x, axis=-1, keepdims=True)
    var = jnp.mean(jnp.square(x - mean), axis=-1, keepdims=True)
    return (x - mean) * lax.rsqrt(var + eps) * g + b


def _cparams(semantics, est_bytes):
    # scoped VMEM sized from resident weights + double-buffered tiles (+ slack),
    # clamped to [32 MiB, 64 MiB] so it stays within v7x physical VMEM.
    limit = int(min(max(2 * int(est_bytes) + (4 << 20), 32 << 20), 64 << 20))
    return pltpu.CompilerParams(dimension_semantics=semantics,
                                vmem_limit_bytes=limit)


def _roll_probe_kernel(x_ref, o_ref):
    o_ref[...] = pltpu.roll(x_ref[...], 1, axis=1)


@functools.lru_cache(maxsize=1)
def _roll_convention():
    """One-time probe of pltpu.roll's lane-roll direction.

    'np'  : roll(x, s)[k] == x[(k - s) % n]   (numpy convention)
    'rev' : roll(x, s)[k] == x[(k + s) % n]
    'concat': fall back to slice+concat rolls (exact semantics, no pltpu.roll).
    """
    try:
        x = jnp.tile(lax.iota(jnp.int32, 128)[None, :], (8, 1))
        y = pl.pallas_call(
            _roll_probe_kernel,
            out_shape=jax.ShapeDtypeStruct((8, 128), jnp.int32),
        )(x)
        v = int(np.asarray(y)[0, 0])
    except Exception:
        return "concat"
    if v == 127:
        return "np"
    if v == 1:
        return "rev"
    return "concat"


# ----------------------------------------------------------------------------
# QKV projection: x @ W_qkv -> q, k, v (lane-dense (rows, n_head*d_head) outputs)
# row-tiled, weights resident.  No rwq/rrq duplication (biases folded in attention).
# ----------------------------------------------------------------------------
def _qkv_kernel(x_ref, wqkv_ref, q_ref, k_ref, v_ref, *, nd, compute_dtype):
    x = x_ref[...].astype(compute_dtype)
    w = wqkv_ref[...].astype(compute_dtype)
    qkv = jnp.dot(x, w, preferred_element_type=jnp.float32)      # (TM, 3*nd)
    q_ref[...] = qkv[:, :nd].astype(q_ref.dtype)
    k_ref[...] = qkv[:, nd:2 * nd].astype(k_ref.dtype)
    v_ref[...] = qkv[:, 2 * nd:].astype(v_ref.dtype)


def qkv_project(x, w_qkv, *, n_head, d_head, compute_dtype, row_tile=512):
    M, d_model = x.shape
    nd = n_head * d_head
    tm = M if M <= row_tile else row_tile
    esz = jnp.dtype(compute_dtype).itemsize
    est = (tm * d_model + d_model * 3 * nd + 3 * tm * nd) * esz + tm * 3 * nd * 4
    out_sd = jax.ShapeDtypeStruct((M, nd), compute_dtype)
    kernel = functools.partial(_qkv_kernel, nd=nd, compute_dtype=compute_dtype)
    return pl.pallas_call(
        kernel,
        grid=(pl.cdiv(M, tm),),
        in_specs=[
            pl.BlockSpec((tm, d_model), lambda i: (i, 0)),
            pl.BlockSpec((d_model, 3 * nd), lambda i: (0, 0)),   # resident weights
        ],
        out_specs=[
            pl.BlockSpec((tm, nd), lambda i: (i, 0)),
            pl.BlockSpec((tm, nd), lambda i: (i, 0)),
            pl.BlockSpec((tm, nd), lambda i: (i, 0)),
        ],
        out_shape=(out_sd, out_sd, out_sd),
        compiler_params=_cparams(("parallel",), est),
    )(x, w_qkv)


# ----------------------------------------------------------------------------
# fused attention kernel:
#   r-projection + bias folding + AC + BD + rel-shift + causal mask + softmax + P@V
# grid=(B, Q//tq); all heads handled per grid step; ONE lane-dense (tq, nd) output store.
# ----------------------------------------------------------------------------
def _attn_kernel(q_ref, k_ref, v_ref, r_ref, wr_ref, rwb_ref, rrb_ref, o_ref, *,
                 n_head, d_head, scale, tq, roll_mode, compute_dtype):
    cdt = compute_dtype
    K = k_ref.shape[0]
    R = r_ref.shape[0]          # == K (mems=None path, asserted in the wrapper)

    # fused relative-position key projection (tiny; r and w_r are resident)
    r_head_k = jnp.dot(r_ref[...].astype(cdt), wr_ref[...].astype(cdt),
                       preferred_element_type=jnp.float32).astype(cdt)   # (R, nd)

    # ---- loop-invariant masks, computed ONCE per grid step (shared by all heads) ----
    row0 = pl.program_id(1) * tq
    q_pos = row0 + lax.broadcasted_iota(jnp.int32, (tq, K), 0)
    k_pos = lax.broadcasted_iota(jnp.int32, (tq, K), 1)
    causal = k_pos > q_pos
    if roll_mode == "rev":
        s = (R - 1) - q_pos                         # per-row roll amount (rev convention)
    else:
        s = jnp.where(q_pos == R - 1, 0, q_pos + 1)  # (q_pos + 1) % R, numpy convention
    shift_steps = []                                 # [(amt, per-row select mask)]
    amt = 1
    while amt < R:
        shift_steps.append((amt, (s & amt) != 0))
        amt *= 2

    def _roll(x, a):
        if roll_mode == "concat":
            return jnp.concatenate([x[:, R - a:], x[:, :R - a]], axis=-1)
        return pltpu.roll(x, a, axis=1)

    exact_softmax = jnp.dtype(cdt) == jnp.dtype(jnp.float32)

    av_parts = []
    for h in range(n_head):                          # unrolled over heads
        lo = h * d_head
        hi = lo + d_head
        q_h = q_ref[:, lo:hi].astype(cdt)            # (tq, D)
        k_h = k_ref[:, lo:hi].astype(cdt)            # (K, D)
        v_h = v_ref[:, lo:hi].astype(cdt)            # (K, D)
        rk_h = r_head_k[:, lo:hi]                    # (R, D)
        rw_h = q_h + rwb_ref[h:h + 1, :]             # r_w_bias folded here
        rr_h = q_h + rrb_ref[h:h + 1, :]             # r_r_bias folded here

        ac = lax.dot_general(rw_h, k_h, (((1,), (1,)), ((), ())),
                             preferred_element_type=jnp.float32)          # (tq, K)
        bd = lax.dot_general(rr_h, rk_h, (((1,), (1,)), ((), ())),
                             preferred_element_type=jnp.float32)          # (tq, R)

        # Transformer-XL relative shift: per-row circular roll implemented as a
        # log2(R)-step barrel shifter of uniform rolls gated by the (precomputed)
        # per-row bit masks; wrapped values land only in the causally masked region.
        for a, sel in shift_steps:
            bd = jnp.where(sel, _roll(bd, a), bd)

        score = (ac + bd) * scale
        score = jnp.where(causal, FLOAT32_MIN, score)
        score = score - jnp.max(score, axis=-1, keepdims=True)
        p = jnp.exp(score)
        denom = jnp.sum(p, axis=-1, keepdims=True)
        if exact_softmax:
            p = p / denom                                       # strict f32 path
        else:
            p = p * pl.reciprocal(denom, approx=True)           # EUP, perf path
        av_parts.append(jnp.dot(p.astype(cdt), v_h, preferred_element_type=jnp.float32))

    # single lane-dense (tq, n_head*d_head) store (no per-head masked narrow stores)
    o_ref[...] = jnp.concatenate(av_parts, axis=-1).astype(o_ref.dtype)


def fused_attention(q, k, v, r, w_r, rwb, rrb, *, bsz, qlen, n_head, d_head, scale,
                    compute_dtype):
    nd = n_head * d_head
    R, d_model = r.shape
    assert R == qlen, "mems=None path assumes klen == qlen == r.shape[0]"
    assert qlen % 8 == 0 or bsz == 1, "qlen should be a multiple of 8"

    # Q tiling: bounds the per-head f32 (tq, K) temporaries and gives the v7x
    # megacore a second parallel grid axis.
    tq = qlen
    for t in (256, 128):
        if qlen > t and qlen % t == 0:
            tq = t
            break
    nq = qlen // tq

    # pltpu.roll (XLU) only when the lane extent is 128-aligned; exact concat otherwise.
    roll_mode = _roll_convention() if (R % 128 == 0) else "concat"

    esz = jnp.dtype(compute_dtype).itemsize
    est = (2 * tq * nd + 2 * qlen * nd + R * d_model + d_model * nd
           + 2 * n_head * d_head) * esz + 8 * tq * R * 4

    kernel = functools.partial(
        _attn_kernel, n_head=n_head, d_head=d_head, scale=scale, tq=tq,
        roll_mode=roll_mode, compute_dtype=compute_dtype)
    return pl.pallas_call(
        kernel,
        grid=(bsz, nq),
        in_specs=[
            pl.BlockSpec((tq, nd), lambda b, i: (b * nq + i, 0)),     # q tile
            pl.BlockSpec((qlen, nd), lambda b, i: (b, 0)),            # k (full klen)
            pl.BlockSpec((qlen, nd), lambda b, i: (b, 0)),            # v (full klen)
            pl.BlockSpec((R, d_model), lambda b, i: (0, 0)),          # r        (resident)
            pl.BlockSpec((d_model, nd), lambda b, i: (0, 0)),         # w_r      (resident)
            pl.BlockSpec((n_head, d_head), lambda b, i: (0, 0)),      # r_w_bias (resident)
            pl.BlockSpec((n_head, d_head), lambda b, i: (0, 0)),      # r_r_bias (resident)
        ],
        out_specs=pl.BlockSpec((tq, nd), lambda b, i: (b * nq + i, 0)),
        out_shape=jax.ShapeDtypeStruct((bsz * qlen, nd), compute_dtype),
        compiler_params=_cparams(("parallel", "parallel"), est),
    )(q, k, v, r, w_r, rwb, rrb)


# ----------------------------------------------------------------------------
# fused o-proj + residual + LN + PositionwiseFF + residual + LN (post-norm)
# row-tiled over bsz*qlen, weights resident.
# ----------------------------------------------------------------------------
def _oproj_ffn_kernel(av_ref, x_ref, wo_ref, g1_ref, b1_ref,
                      w1_ref, fb1_ref, w2_ref, fb2_ref, g2_ref, b2_ref,
                      o_ref, *, eps, compute_dtype):
    cdt = compute_dtype
    attn_out = jnp.dot(av_ref[...].astype(cdt), wo_ref[...].astype(cdt),
                       preferred_element_type=jnp.float32)
    y = x_ref[...].astype(jnp.float32) + attn_out
    y = _layer_norm(y, g1_ref[...], b1_ref[...], eps)

    h = jnp.dot(y.astype(cdt), w1_ref[...].astype(cdt),
                preferred_element_type=jnp.float32) + fb1_ref[...]
    h = jnp.maximum(h, 0.0).astype(cdt)        # keep only the compute-dtype copy live
    core = jnp.dot(h, w2_ref[...].astype(cdt),
                   preferred_element_type=jnp.float32) + fb2_ref[...]
    z = y + core
    o_ref[...] = _layer_norm(z, g2_ref[...], b2_ref[...], eps).astype(o_ref.dtype)


def oproj_ffn(attn_vec, resid, w_o, ln1_g, ln1_b, w1, fb1, w2, fb2, ln2_g, ln2_b,
              *, eps, compute_dtype, row_tile=512):
    M, nd = attn_vec.shape
    d_model = w_o.shape[1]
    d_inner = w1.shape[1]
    tm = M if M <= row_tile else row_tile
    esz = jnp.dtype(compute_dtype).itemsize
    est = ((nd * d_model + d_model * d_inner + d_inner * d_model) * esz
           + (tm * nd + tm * d_model) * esz + tm * d_inner * 4 + 2 * tm * d_model * 4)
    kernel = functools.partial(_oproj_ffn_kernel, eps=eps, compute_dtype=compute_dtype)
    return pl.pallas_call(
        kernel,
        grid=(pl.cdiv(M, tm),),
        in_specs=[
            pl.BlockSpec((tm, nd), lambda i: (i, 0)),
            pl.BlockSpec((tm, d_model), lambda i: (i, 0)),
            pl.BlockSpec((nd, d_model), lambda i: (0, 0)),       # resident weights
            pl.BlockSpec((1, d_model), lambda i: (0, 0)),
            pl.BlockSpec((1, d_model), lambda i: (0, 0)),
            pl.BlockSpec((d_model, d_inner), lambda i: (0, 0)),
            pl.BlockSpec((1, d_inner), lambda i: (0, 0)),
            pl.BlockSpec((d_inner, d_model), lambda i: (0, 0)),
            pl.BlockSpec((1, d_model), lambda i: (0, 0)),
            pl.BlockSpec((1, d_model), lambda i: (0, 0)),
            pl.BlockSpec((1, d_model), lambda i: (0, 0)),
        ],
        out_specs=pl.BlockSpec((tm, d_model), lambda i: (i, 0)),
        out_shape=jax.ShapeDtypeStruct((M, d_model), resid.dtype),
        compiler_params=_cparams(("parallel",), est),
    )(attn_vec, resid, w_o, ln1_g, ln1_b, w1, fb1, w2, fb2, ln2_g, ln2_b)


# ----------------------------------------------------------------------------
# full decoder-layer forward
# ----------------------------------------------------------------------------
def decoder_layer_forward(params, dec_inp, r, r_w_bias, r_r_bias, dec_attn_mask=None,
                          *, compute_dtype=jnp.bfloat16):
    Q, B, d_model = dec_inp.shape
    N, D = r_w_bias.shape
    scale = 1.0 / (D ** 0.5)
    cdt = compute_dtype

    # Only the standard uni_attn causal mask (regenerated in-register inside the
    # attention kernel) is supported; verify when a concrete mask is provided.
    if dec_attn_mask is not None:
        try:
            m = np.asarray(dec_attn_mask)
        except Exception:
            m = None
        if m is not None:
            assert np.array_equal(m, np.triu(np.ones((Q, Q), dtype=bool), k=1)), \
                "only the uni_attn causal mask (mems=None) is supported"

    # one-time weight casts (bf16 weights halve HBM->VMEM bytes; accumulation is f32)
    w_qkv = params["w_qkv"].astype(cdt)
    w_r = params["w_r"].astype(cdt)
    w_o = params["w_o"].astype(cdt)
    ff_w1 = params["ff_w1"].astype(cdt)
    ff_w2 = params["ff_w2"].astype(cdt)
    rwb = r_w_bias.astype(cdt)                 # (N, D), folded inside attention kernel
    rrb = r_r_bias.astype(cdt)
    r_c = r.astype(cdt)

    # batch-major, lane-dense activations: (B*Q, d_model)
    x_b = jnp.transpose(dec_inp, (1, 0, 2)).reshape(B * Q, d_model)

    q, k, v = qkv_project(x_b, w_qkv, n_head=N, d_head=D, compute_dtype=cdt)

    attn_vec = fused_attention(q, k, v, r_c, w_r, rwb, rrb, bsz=B, qlen=Q,
                               n_head=N, d_head=D, scale=scale,
                               compute_dtype=cdt)                        # (B*Q, nd)

    out2d = oproj_ffn(attn_vec, x_b, w_o,
                      params["attn_ln_g"], params["attn_ln_b"],
                      ff_w1, params["ff_b1"], ff_w2, params["ff_b2"],
                      params["ff_ln_g"], params["ff_ln_b"],
                      eps=LN_EPS, compute_dtype=cdt)                     # (B*Q, d_model)

    out = jnp.transpose(out2d.reshape(B, Q, d_model), (1, 0, 2))
    new_mems = None
    ada_prob = None
    return out, new_mems, (ada_prob,)


# ----------------------------------------------------------------------------
# pure-JAX reference (same math as the PyTorch module) for the correctness check
# ----------------------------------------------------------------------------
def reference_forward(params, dec_inp, r, r_w_bias, r_r_bias, mask):
    Q, B, dm = dec_inp.shape
    N, D = r_w_bias.shape
    w_heads = dec_inp @ params["w_qkv"]
    q, k, v = jnp.split(w_heads, 3, axis=-1)
    q = q.reshape(Q, B, N, D)
    k = k.reshape(Q, B, N, D)
    v = v.reshape(Q, B, N, D)
    r_head_k = (r @ params["w_r"]).reshape(-1, N, D)
    rw_q = q + r_w_bias
    rr_q = q + r_r_bias
    AC = jnp.einsum("ibnd,jbnd->ijbn", rw_q, k)
    BD = jnp.einsum("ibnd,jnd->ijbn", rr_q, r_head_k)
    Qx, R, Bx, Nx = BD.shape
    zp = jnp.zeros((Qx, 1, Bx, Nx), BD.dtype)
    xp = jnp.concatenate([zp, BD], axis=1).reshape(R + 1, Qx, Bx, Nx)
    BD = xp[1:].reshape(Qx, R, Bx, Nx)
    score = (AC + BD) * (1.0 / D ** 0.5)
    score = jnp.where(mask[:, :, None, None], FLOAT32_MIN, score)
    prob = jax.nn.softmax(score, axis=1)
    av = jnp.einsum("ijbn,jbnd->ibnd", prob, v).reshape(Q, B, N * D)
    ao = av @ params["w_o"]

    def ln(x, g, b):
        m = x.mean(-1, keepdims=True)
        var = ((x - m) ** 2).mean(-1, keepdims=True)
        return (x - m) / jnp.sqrt(var + LN_EPS) * g.reshape(-1) + b.reshape(-1)

    out = ln(dec_inp + ao, params["attn_ln_g"], params["attn_ln_b"])
    core = (jnp.maximum(out @ params["ff_w1"] + params["ff_b1"].reshape(-1), 0.0)
            @ params["ff_w2"] + params["ff_b2"].reshape(-1))
    out = ln(out + core, params["ff_ln_g"], params["ff_ln_b"])
    return out


# ----------------------------------------------------------------------------
if __name__ == "__main__":
    qlen, bsz = 16, 2
    d_model, n_head, d_head, d_inner = 64, 4, 16, 128
    nd = n_head * d_head

    key = jax.random.PRNGKey(0)
    ks = jax.random.split(key, 16)

    def nrm(k, shape, s=0.1):
        return (s * jax.random.normal(k, shape)).astype(jnp.float32)

    params = {
        # weights stored pre-transposed: x @ W (PyTorch stores (out, in), applies x @ W^T)
        "w_qkv": nrm(ks[0], (d_model, 3 * nd)),
        "w_r":   nrm(ks[1], (d_model, nd)),
        "w_o":   nrm(ks[2], (nd, d_model)),
        "attn_ln_g": (1.0 + nrm(ks[3], (1, d_model))),
        "attn_ln_b": nrm(ks[4], (1, d_model)),
        "ff_w1": nrm(ks[5], (d_model, d_inner)),
        "ff_b1": nrm(ks[6], (1, d_inner)),
        "ff_w2": nrm(ks[7], (d_inner, d_model)),
        "ff_b2": nrm(ks[8], (1, d_model)),
        "ff_ln_g": (1.0 + nrm(ks[9], (1, d_model))),
        "ff_ln_b": nrm(ks[10], (1, d_model)),
    }

    dec_inp = jax.random.normal(ks[11], (qlen, bsz, d_model), jnp.float32)
    r = jax.random.normal(ks[12], (qlen, d_model), jnp.float32)        # rel. pos. emb
    r_w_bias = nrm(ks[13], (n_head, d_head), 0.3)
    r_r_bias = nrm(ks[14], (n_head, d_head), 0.3)
    dec_attn_mask = jnp.triu(jnp.ones((qlen, qlen), dtype=bool), k=1)  # causal (uni_attn)

    ref = reference_forward(params, dec_inp, r, r_w_bias, r_r_bias, dec_attn_mask)

    # strict check on the f32-compute path (exact softmax normalization)
    out_f32, new_mems, (ada_prob,) = decoder_layer_forward(
        params, dec_inp, r, r_w_bias, r_r_bias, dec_attn_mask,
        compute_dtype=jnp.float32)
    out_f32 = jax.block_until_ready(out_f32)
    assert out_f32.shape == (qlen, bsz, d_model)
    err32 = float(np.max(np.abs(np.asarray(out_f32) - np.asarray(ref))))
    assert np.allclose(np.asarray(out_f32), np.asarray(ref), rtol=5e-3, atol=5e-3), err32

    # performance path: bf16 MXU operands, f32 accumulation (loose sanity check)
    out_bf16, _, _ = decoder_layer_forward(
        params, dec_inp, r, r_w_bias, r_r_bias, dec_attn_mask,
        compute_dtype=jnp.bfloat16)
    out_bf16 = jax.block_until_ready(out_bf16)
    assert np.all(np.isfinite(np.asarray(out_bf16, dtype=np.float32)))
    assert np.allclose(np.asarray(out_bf16, dtype=np.float32), np.asarray(ref),
                       rtol=0.1, atol=0.3)

    print("KERNEL_OK")
</pallas_src>

<mosaic_0001>
module attributes {stable_mosaic.version = 11 : i64} {
  func.func @_qkv_kernel(%arg0: i32, %arg1: memref<32x64xf32, #tpu.memory_space<vmem>>, %arg2: memref<64x192xf32, #tpu.memory_space<vmem>>, %arg3: memref<32x64xf32, #tpu.memory_space<vmem>>, %arg4: memref<32x64xf32, #tpu.memory_space<vmem>>, %arg5: memref<32x64xf32, #tpu.memory_space<vmem>>) attributes {dimension_semantics = [#tpu.dimension_semantics<parallel>], iteration_bounds = array<i64: 1>, scalar_prefetch = 0 : i64, scratch_operands = 0 : i64, tpu.core_type = #tpu.core_type<tc>, window_params = [{transform_indices = @transform_0, window_bounds = array<i64: 32, 64>}, {pipeline_mode = #tpu.pipeline_mode<synchronous>, transform_indices = @transform_1, window_bounds = array<i64: 64, 192>}, {transform_indices = @transform_2, window_bounds = array<i64: 32, 64>}, {transform_indices = @transform_3, window_bounds = array<i64: 32, 64>}, {transform_indices = @transform_4, window_bounds = array<i64: 32, 64>}]} {
    %c0 = arith.constant 0 : index
    %c0_0 = arith.constant 0 : index
    %0 = vector.load %arg1[%c0, %c0_0] : memref<32x64xf32, #tpu.memory_space<vmem>>, vector<32x64xf32>
    %c0_1 = arith.constant 0 : index
    %c0_2 = arith.constant 0 : index
    %1 = vector.load %arg2[%c0_1, %c0_2] : memref<64x192xf32, #tpu.memory_space<vmem>>, vector<64x192xf32>
    %cst = arith.constant dense<0.000000e+00> : vector<32x192xf32>
    %2 = tpu.matmul %0, %1, %cst {dimension_numbers = #tpu.dot_dimension_numbers<[1], [0], [0], [1], [0, 0, 1, 1], [], []>} : vector<32x64xf32>, vector<64x192xf32>, vector<32x192xf32> -> vector<32x192xf32>
    %3 = vector.extract_strided_slice %2 {offsets = [0, 0], sizes = [32, 64], strides = [1, 1]} : vector<32x192xf32> to vector<32x64xf32>
    %c0_3 = arith.constant 0 : index
    %c0_4 = arith.constant 0 : index
    %4 = vector.load %arg3[%c0_3, %c0_4] : memref<32x64xf32, #tpu.memory_space<vmem>>, vector<32x64xf32>
    tpu.vector_store %arg3[%c0_3, %c0_4], %3 {strides = array<i32>} : memref<32x64xf32, #tpu.memory_space<vmem>>, vector<32x64xf32>,
    %5 = vector.extract_strided_slice %2 {offsets = [0, 64], sizes = [32, 64], strides = [1, 1]} : vector<32x192xf32> to vector<32x64xf32>
    %c0_5 = arith.constant 0 : index
    %c0_6 = arith.constant 0 : index
    %6 = vector.load %arg4[%c0_5, %c0_6] : memref<32x64xf32, #tpu.memory_space<vmem>>, vector<32x64xf32>
    tpu.vector_store %arg4[%c0_5, %c0_6], %5 {strides = array<i32>} : memref<32x64xf32, #tpu.memory_space<vmem>>, vector<32x64xf32>,
    %7 = vector.extract_strided_slice %2 {offsets = [0, 128], sizes = [32, 64], strides = [1, 1]} : vector<32x192xf32> to vector<32x64xf32>
    %c0_7 = arith.constant 0 : index
    %c0_8 = arith.constant 0 : index
    %8 = vector.load %arg5[%c0_7, %c0_8] : memref<32x64xf32, #tpu.memory_space<vmem>>, vector<32x64xf32>
    tpu.vector_store %arg5[%c0_7, %c0_8], %7 {strides = array<i32>} : memref<32x64xf32, #tpu.memory_space<vmem>>, vector<32x64xf32>,
    return
  }
  func.func @transform_0(%arg0: i32) -> (i32, i32) {
    %c0_i32 = arith.constant 0 : i32
    %c0_i32_0 = arith.constant 0 : i32
    return %arg0, %c0_i32 : i32, i32
  }
  func.func @transform_1(%arg0: i32) -> (i32, i32) {
    %c0_i32 = arith.constant 0 : i32
    %c0_i32_0 = arith.constant 0 : i32
    %c0_i32_1 = arith.constant 0 : i32
    return %c0_i32, %c0_i32_0 : i32, i32
  }
  func.func @transform_2(%arg0: i32) -> (i32, i32) {
    %c0_i32 = arith.constant 0 : i32
    %c0_i32_0 = arith.constant 0 : i32
    return %arg0, %c0_i32 : i32, i32
  }
  func.func @transform_3(%arg0: i32) -> (i32, i32) {
    %c0_i32 = arith.constant 0 : i32
    %c0_i32_0 = arith.constant 0 : i32
    return %arg0, %c0_i32 : i32, i32
  }
  func.func @transform_4(%arg0: i32) -> (i32, i32) {
    %c0_i32 = arith.constant 0 : i32
    %c0_i32_0 = arith.constant 0 : i32
    return %arg0, %c0_i32 : i32, i32
  }
}

</mosaic_0001>

<bundles_post_ra>
// kernel: tpu_custom_call.1
= control target key start
LH: loop header
LB: loop body
LE: loop exit
PB: predicated region body
PF: predicated region fallthrough
CT: control target
= control target key end

     0   :  { %10 = vsyncpa [#allocation3], 0  ;;  %s531_s0 = inlined_call_operand.hbm [shape: f32[32,64], index: 0, kind: input, shape index: {}]   ;;  %s532_s1 = inlined_call_operand.hbm [shape: f32[64,192], index: 1, kind: input, shape index: {}]   ;;  %s533_s2 = inlined_call_operand.hbm [shape: f32[32,64], index: 2, kind: output, shape index: {0}]   ;;  %s534_s3 = inlined_call_operand.hbm [shape: f32[32,64], index: 3, kind: output, shape index: {1}]   ;;  %s535_s4 = inlined_call_operand.hbm [shape: f32[32,64], index: 4, kind: output, shape index: {2}]  }
   0x1   :  { %11 = vsyncpa [#allocation6], 0 }
   0x2   :  { %12 = vsyncpa [#allocation4], 0 }
   0x3   :  { %13 = vsyncpa [#allocation9], 0  ;;  %s400_s15 = smov [#allocation2]   ;;  %s282_s19 = scalar_lea.hbm %s531_s0, 512 }
   0x4   :  { %s19_s16 = sshll.u32 %s400_s15, 4  ;;  %p283_p0 = scmp.ne.s32.totalorder %s531_s0, %s282_s19  ;;  %s20_s16 = int_to_ptr.vmem [resolvable:$true] %s19_s16 }
   0x5   :  { %p286_p1 = scmp.lt.u32.totalorder %s282_s19, %s531_s0 }
   0x7   :  { %p288_p2 = pnand %p286_p1, %p283_p0 }
   0x9   :  { %291 = shalt.err (!%p288_p2)
}
   0xa   :  { %s292_s24 = scalar_lea.vmem %s20_s16, 512  ;;  %p297_p4 = scmp.lt.s32.totalorder %s20_s16, %s20_s16 }
   0xb   :  { %p293_p3 = scmp.ne.s32.totalorder %s20_s16, %s292_s24  ;;  %p298_p5 = scmp.lt.s32.totalorder %s292_s24, %s292_s24 }
   0xd   :  { %p299_p6 = por %p298_p5, %p297_p4 }
   0xf   :  { %p300_p7 = pnand %p299_p6, %p293_p3 }
  0x11   :  { %303 = shalt.err (!%p300_p7)
}
  0x12   :  { %s401_s25 = smov 128   ;;  %s402_s26 = smov 8  }
  0x13   :  { %25 = dma.hbm_to_vmem [thread:$0]  %s531_s0, 512, %s20_s16, [#allocation3], %s401_s25, %s401_s25, %s402_s26  }
  0x14   :  { %s403_s29 = smov [#allocation5]   ;;  %s304_s7 = scalar_lea.hbm %s532_s1, 2048 }
  0x15   :  { %s31_s30 = sshll.u32 %s403_s29, 4  ;;  %p305_p8 = scmp.ne.s32.totalorder %s532_s1, %s304_s7  ;;  %s32_s30 = int_to_ptr.vmem [resolvable:$true] %s31_s30 }
  0x16   :  { %p308_p9 = scmp.lt.u32.totalorder %s304_s7, %s532_s1 }
  0x18   :  { %p310_p10 = pnand %p308_p9, %p305_p8 }
  0x1a   :  { %313 = shalt.err (!%p310_p10)
}
  0x1b   :  { %s314_s12 = scalar_lea.vmem %s32_s30, 2048  ;;  %p319_p12 = scmp.lt.s32.totalorder %s32_s30, %s32_s30 }
  0x1c   :  { %p315_p11 = scmp.ne.s32.totalorder %s32_s30, %s314_s12  ;;  %p320_p13 = scmp.lt.s32.totalorder %s314_s12, %s314_s12 }
  0x1e   :  { %p321_p0 = por %p320_p13, %p319_p12 }
  0x20   :  { %p322_p1 = pnand %p321_p0, %p315_p11 }
  0x22   :  { %325 = shalt.err (!%p322_p1)
}
  0x23   :  { %s404_s0 = smov 256   ;;  %s405_s13 = smov 16  }
  0x24   :  { %37 = dma.hbm_to_vmem [thread:$0]  %s532_s1, 2048, %s32_s30, [#allocation6], %s404_s0, %s404_s0, %s405_s13  }
  0x25   :  { %392 = dma.done.wait [#allocation3], 512  }
  0x26   :  { %393 = vsyncadd [#allocation3], 4294966784 }
  0x27   :  { %394 = dma.done.wait [#allocation6], 2048  }
  0x28   :  { %395 = vsyncadd [#allocation6], 4294965248  ;;  %v406_v0 = vmov 0.0   ;;  %v49_v1 = vld [vmem:[#allocation5 + $0x8] sm:$0xff]  ;;  %v51_v2 = vld [vmem:[#allocation5 + $0x18] sm:$0xff]  ;;  %vm64_vm0 = vcmask 523264  }
  0x29   :  { %141 = vmatprep.mubr.f32.mxu0 %v406_v0  ;;  %153 = vmatprep.mubr.f32.mxu1 %v406_v0  ;;  %v48_v3 = vld [vmem:[#allocation5] sm:$0xff]  ;;  %v247_v4 = vpack.c.bf16 %v51_v2, %v49_v1  ;;  %v50_v5 = vld [vmem:[#allocation5 + $0x10] sm:$0xff]  ;;  %v53_v6 = vld [vmem:[#allocation5 + $0x28] sm:$0xff]  ;;  %s407_s1 = smov [#allocation7]   ;;  %s408_s17 = smov 64  }
  0x2a   :  { %v55_v7 = vld [vmem:[#allocation5 + $0x38] sm:$0xff]  ;;  %v249_v8 = vpack.c.bf16 %v50_v5, %v48_v3  ;;  %v52_v10 = vld [vmem:[#allocation5 + $0x20] sm:$0xff]  ;;  %v54_v11 = vld [vmem:[#allocation5 + $0x30] sm:$0xff]  ;;  %s199_s16 = sshll.u32 %s407_s1, 4  ;;  %s200_s16 = int_to_ptr.vmem [resolvable:$true] %s199_s16 }
  0x2b   :  { %v251_v9 = vpack.c.bf16 %v55_v7, %v53_v6  ;;  %v57_v12 = vld [vmem:[#allocation5 + $0x48] sm:$0xff]  ;;  %248 = vmatprep.subr.bf16.mxu0 %v247_v4  ;;  %263 = vmatprep.subr.bf16.mxu1 %v247_v4  ;;  %v59_v13 = vld [vmem:[#allocation5 + $0x58] sm:$0xff]  ;;  %v253_v14 = vpack.c.bf16 %v54_v11, %v52_v10  ;;  %v56_v16 = vld [vmem:[#allocation5 + $0x40] sm:$0xff]  ;;  %s326_s18 = scalar_lea.vmem %s200_s16, 512  ;;  %p331_p3 = scmp.lt.s32.totalorder %s200_s16, %s200_s16 }
  0x2c   :  { %250 = vmatpush1.bf16.msra.mxu0 %v249_v8  ;;  %267 = vmatpush1.bf16.msra.mxu1 %v249_v8  ;;  %v255_v15 = vpack.c.bf16 %v59_v13, %v57_v12  ;;  %v58_v17 = vld [vmem:[#allocation5 + $0x50] sm:$0xff]  ;;  %v61_v18 = vld [vmem:[#allocation5 + $0x68] sm:$0xff]  ;;  %v63_v19 = vld [vmem:[#allocation5 + $0x78] sm:$0xff]  ;;  %p327_p2 = scmp.ne.s32.totalorder %s200_s16, %s326_s18  ;;  %p332_p4 = scmp.lt.s32.totalorder %s326_s18, %s326_s18 }
  0x2d   :  { %252 = vmatprep.subr.bf16.mxu0 %v251_v9  ;;  %264 = vmatprep.subr.bf16.mxu1 %v251_v9  ;;  %v257_v20 = vpack.c.bf16 %v58_v17, %v56_v16  ;;  %v259_v21 = vpack.c.bf16 %v63_v19, %v61_v18  ;;  %v60_v22 = vld [vmem:[#allocation5 + $0x60] sm:$0xff]  ;;  %v62_v23 = vld [vmem:[#allocation5 + $0x70] sm:$0xff]  ;;  %v45_v27 = vld [vmem:[#allocation2 + $0x8] sm:$0xff] }
  0x2e   :  { %v261_v24 = vpack.c.bf16 %v62_v23, %v60_v22  ;;  %v44_v25 = vld [vmem:[#allocation2] sm:$0xff]  ;;  %v46_v26 = vld [vmem:[#allocation2 + $0x10] sm:$0xff]  ;;  %v47_v28 = vld [vmem:[#allocation2 + $0x18] sm:$0xff]  ;;  %p333_p5 = por %p332_p4, %p331_p3 }
  0x30   :  { %254 = vmatpush1.bf16.msra.mxu0 %v253_v14  ;;  %268 = vmatpush1.bf16.msra.mxu1 %v253_v14  ;;  %p334_p6 = pnand %p333_p5, %p327_p2 }
  0x31   :  { %256 = vmatprep.subr.bf16.mxu0 %v255_v15  ;;  %265 = vmatprep.subr.bf16.mxu1 %v255_v15 }
  0x34   :  { %258 = vmatpush1.bf16.msra.mxu0 %v257_v20  ;;  %269 = vmatpush1.bf16.msra.mxu1 %v257_v20 }
  0x35   :  { %260 = vmatprep.subr.bf16.mxu0 %v259_v21  ;;  %266 = vmatprep.subr.bf16.mxu1 %v259_v21 }
  0x38   :  { %262 = vmatpush1.bf16.msra.mxu0 %v261_v24  ;;  %270 = vmatpush1.bf16.msra.mxu1 %v261_v24 }
  0x3b   :  { %243 = vmatmul.mubr.msk.f32.vlgmr.msra.gmra.mrb[0].mxu0 %vm64_vm0, %v44_v25  ;;  %245 = vmatmul.mubr.msk.f32.vlgmr.msra.gmra.mrb[0].mxu1 %vm64_vm0, %v46_v26 }
  0x3c   :  { %147 = vmatprep.mubr.f32.mxu0 %v406_v0  ;;  %159 = vmatprep.mubr.f32.mxu1 %v406_v0 }
  0x3f   :  { %244 = vmatmul.mubr.msk.f32.gmra.mrb[2].mxu0 %vm64_vm0, %v45_v27  ;;  %246 = vmatmul.mubr.msk.f32.gmra.mrb[2].mxu1 %vm64_vm0, %v47_v28 }
 0x10e   :  { %v143_v29 = vpop.f32.mrb[0].mxu0  ;;  %v155_v30 = vpop.f32.mrb[0].mxu1 }
 0x10f   :  { %166 = vst.msk [vmem:[#allocation7] sm:$0xff] %vm64_vm0, %v143_v29  ;;  %168 = vst.msk [vmem:[#allocation7 + $0x10] sm:$0xff] %vm64_vm0, %v155_v30  ;;  %178 = vrot.lane.b32.xlu1 %v155_v30, %s408_s17  ;;  %v157_v31 = vpop.f32.mrb[1].mxu1  ;;  %174 = vrot.lane.b32.xlu0 %v143_v29, %s408_s17  ;;  %v145_v32 = vpop.f32.mrb[1].mxu0 }
 0x110   :  { %192 = vst.msk [vmem:[#allocation10 + $0x10] sm:$0xff] %vm64_vm0, %v157_v31  ;;  %190 = vst.msk [vmem:[#allocation10] sm:$0xff] %vm64_vm0, %v145_v32 }
 0x112   :  { %v149_v33 = vpop.f32.mrb[2].mxu0  ;;  %v161_v34 = vpop.f32.mrb[2].mxu1 }
 0x113   :  { %167 = vst.msk [vmem:[#allocation7 + $0x8] sm:$0xff] %vm64_vm0, %v149_v33  ;;  %169 = vst.msk [vmem:[#allocation7 + $0x18] sm:$0xff] %vm64_vm0, %v161_v34  ;;  %180 = vrot.lane.b32.xlu1 %v161_v34, %s408_s17  ;;  %v163_v35 = vpop.f32.mrb[3].mxu1  ;;  %176 = vrot.lane.b32.xlu0 %v149_v33, %s408_s17  ;;  %v151_v36 = vpop.f32.mrb[3].mxu0 }
 0x114   :  { %193 = vst.msk [vmem:[#allocation10 + $0x18] sm:$0xff] %vm64_vm0, %v163_v35  ;;  %191 = vst.msk [vmem:[#allocation10 + $0x8] sm:$0xff] %vm64_vm0, %v151_v36 }
 0x115   :  { %337 = shalt.err (!%p334_p6)
}
 0x116   :  { %s338_s21 = scalar_lea.hbm %s533_s2, 512 }
 0x117   :  { %p339_p7 = scmp.ne.s32.totalorder %s533_s2, %s338_s21  ;;  %p342_p8 = scmp.lt.u32.totalorder %s338_s21, %s533_s2 }
 0x119   :  { %p344_p9 = pnand %p342_p8, %p339_p7 }
 0x11b   :  { %347 = shalt.err (!%p344_p9)
}
 0x11c   :  { %205 = dma.vmem_to_hbm [thread:$0]  %s200_s16, 512, %s533_s2, [#allocation4], %s401_s25, %s401_s25, %s402_s26  }
 0x11d   :  { %s409_s30 = smov [#allocation8]   ;;  %s410_s6 = smov [#allocation10]  }
 0x11e   :  { %s211_s5 = sshll.u32 %s409_s30, 4  ;;  %s223_s7 = sshll.u32 %s410_s6, 4  ;;  %s212_s5 = int_to_ptr.vmem [resolvable:$true] %s211_s5  ;;  %s492_s7 = int_to_ptr.vmem [resolvable:$true] %s223_s7 }
 0x11f   :  { %s348_s2 = scalar_lea.vmem %s212_s5, 512  ;;  %p353_p11 = scmp.lt.s32.totalorder %s212_s5, %s212_s5 }
 0x120   :  { %p349_p10 = scmp.ne.s32.totalorder %s212_s5, %s348_s2  ;;  %p354_p12 = scmp.lt.s32.totalorder %s348_s2, %s348_s2 }
 0x122   :  { %p355_p13 = por %p354_p12, %p353_p11 }
 0x124   :  { %p356_p0 = pnand %p355_p13, %p349_p10 }
 0x181   :  { %v179_v37 = vpop.permute.xlu1 %178  ;;  %v175_v38 = vpop.permute.xlu0 %174 }
 0x182   :  { %188 = vst.msk [vmem:[#allocation8 + $0x10] sm:$0xff] %vm64_vm0, %v179_v37  ;;  %186 = vst.msk [vmem:[#allocation8] sm:$0xff] %vm64_vm0, %v175_v38 }
 0x185   :  { %v181_v39 = vpop.permute.xlu1 %180  ;;  %v177_v40 = vpop.permute.xlu0 %176 }
 0x186   :  { %189 = vst.msk [vmem:[#allocation8 + $0x18] sm:$0xff] %vm64_vm0, %v181_v39  ;;  %187 = vst.msk [vmem:[#allocation8 + $0x8] sm:$0xff] %vm64_vm0, %v177_v40 }
 0x187   :  { %359 = shalt.err (!%p356_p0)
}
 0x188   :  { %s360_s10 = scalar_lea.hbm %s534_s3, 512 }
 0x189   :  { %p361_p1 = scmp.ne.s32.totalorder %s534_s3, %s360_s10  ;;  %p364_p2 = scmp.lt.u32.totalorder %s360_s10, %s534_s3 }
 0x18b   :  { %p366_p3 = pnand %p364_p2, %p361_p1 }
 0x18d   :  { %369 = shalt.err (!%p366_p3)
}
 0x18e   :  { %217 = dma.vmem_to_hbm [thread:$0]  %s212_s5, 512, %s534_s3, [#allocation9], %s401_s25, %s401_s25, %s402_s26  }
 0x18f   :  { %s370_s1 = scalar_lea.vmem %s492_s7, 512  ;;  %p375_p5 = scmp.lt.s32.totalorder %s492_s7, %s492_s7 }
 0x190   :  { %p371_p4 = scmp.ne.s32.totalorder %s492_s7, %s370_s1  ;;  %p376_p6 = scmp.lt.s32.totalorder %s370_s1, %s370_s1 }
 0x192   :  { %p377_p7 = por %p376_p6, %p375_p5 }
 0x194   :  { %p378_p8 = pnand %p377_p7, %p371_p4 }
 0x196   :  { %381 = shalt.err (!%p378_p8)
}
 0x197   :  { %s382_s18 = scalar_lea.hbm %s535_s4, 512 }
 0x198   :  { %p383_p9 = scmp.ne.s32.totalorder %s535_s4, %s382_s18  ;;  %p386_p10 = scmp.lt.u32.totalorder %s382_s18, %s535_s4 }
 0x19a   :  { %p388_p11 = pnand %p386_p10, %p383_p9 }
 0x19c   :  { %391 = shalt.err (!%p388_p11)
}
 0x19d   :  { %229 = dma.vmem_to_hbm [thread:$0]  %s492_s7, 512, %s535_s4, [#allocation9], %s401_s25, %s401_s25, %s402_s26  }
 0x19e   :  { %396 = dma.done.wait [#allocation4], 512  }
 0x19f   :  { %397 = vsyncadd [#allocation4], 4294966784 }
 0x1a0   :  { %398 = dma.done.wait [#allocation9], 1024  }
 0x1a1   :  { %399 = vsyncadd [#allocation9], 4294966272 }
 0x1a2   :  { %239 = vsyncpa [#allocation3], 1 }
 0x1a3   :  { %240 = vsyncpa [#allocation6], 1 }
 0x1a4   :  { %241 = vsyncpa [#allocation4], 1 }
 0x1a5   :  { %242 = vsyncpa [#allocation9], 1 }

</bundles_post_ra>
